<compile_context>
chip_gen: v7x
topology: tpu7x:2x2x1
jax: 0.10.0
libtpu: 0.0.40
codegen_flags: <defaults>
</compile_context>

<pallas_src>
import functools

import jax
import jax.numpy as jnp
from jax import lax
from jax.experimental import pallas as pl
from jax.experimental.pallas import tpu as pltpu


def _pearsonr_kernel(x_ref, y_ref, corr_ref,
                     sx_ref, sy_ref, sxy_ref, sxx_ref, syy_ref,
                     *, batch_size, chunk_rows, n_chunks, unroll):
    bi = pl.program_id(1)
    nb = pl.num_programs(1)

    @pl.when(bi == 0)
    def _init():
        sx_ref[...] = jnp.zeros_like(sx_ref)
        sy_ref[...] = jnp.zeros_like(sy_ref)
        sxy_ref[...] = jnp.zeros_like(sxy_ref)
        sxx_ref[...] = jnp.zeros_like(sxx_ref)
        syy_ref[...] = jnp.zeros_like(syy_ref)

    def chunk_body(c, carry):
        start = pl.multiple_of(c * chunk_rows, chunk_rows)
        # Per-chunk f32 temporaries only: (chunk_rows, tH), not (tB, tH).
        x = x_ref[pl.ds(start, chunk_rows), :].astype(jnp.float32)
        y = y_ref[pl.ds(start, chunk_rows), :].astype(jnp.float32)
        sx_ref[...] += jnp.sum(x, axis=0, keepdims=True)
        sy_ref[...] += jnp.sum(y, axis=0, keepdims=True)
        sxy_ref[...] += jnp.sum(x * y, axis=0, keepdims=True)
        sxx_ref[...] += jnp.sum(x * x, axis=0, keepdims=True)
        syy_ref[...] += jnp.sum(y * y, axis=0, keepdims=True)
        return carry

    lax.fori_loop(0, n_chunks, chunk_body, 0, unroll=unroll)

    @pl.when(bi == nb - 1)
    def _finalize():
        inv_n = 1.0 / batch_size
        sx = sx_ref[...]
        sy = sy_ref[...]
        cov = sxy_ref[...] - sx * sy * inv_n       # n * covariance (Bessel cancels)
        var_x = sxx_ref[...] - sx * sx * inv_n     # n * variance
        var_y = syy_ref[...] - sy * sy * inv_n
        corr_ref[...] = cov * lax.rsqrt(var_x * var_y)


def _round_up(x, m):
    return ((x + m - 1) // m) * m


def _pick_tile(dim, granule, target):
    """Largest multiple of `granule` that divides `dim` and is <= target
    (but >= granule).  Falls back to the full dim if none exists."""
    if dim % granule != 0:
        return dim
    t = max((min(target, dim) // granule) * granule, granule)
    while t >= granule:
        if dim % t == 0:
            return t
        t -= granule
    return dim


def _vmem_capacity_bytes():
    """Physical VMEM per core; conservative v7x fallback if the query fails."""
    try:
        info = pltpu.get_tpu_info()
        cap = getattr(info, "vmem_capacity_bytes", None)
        if cap:
            return int(cap)
    except Exception:
        pass
    return 64 * 1024 * 1024


def pearsonr_loss(x, y, *, target_tile_bytes=None):
    """x, y: (bs, hidden_dim). Returns scalar float32 loss."""
    assert x.shape == y.shape and x.ndim == 2
    B, H = x.shape
    itemsize = jnp.dtype(x.dtype).itemsize
    # dtype-aware sublane granule: 8 rows/vreg for f32, 16 for bf16, 32 for int8.
    gran = {4: 8, 2: 16, 1: 32}.get(itemsize, 8)

    vmem_cap = _vmem_capacity_bytes()
    if target_tile_bytes is None:
        # ~6.4 MiB on v7x (64 MiB VMEM), 8 MiB on v5e/v6e (128 MiB VMEM).
        target_tile_bytes = min(8 * 1024 * 1024, vmem_cap // 10)

    # ---- hidden (lane) tiling: pad to a multiple of 128, cap tile at 1024,
    #      and keep >= 2 hidden slabs so both v7x TensorCores get work.
    Hp = _round_up(H, 128)
    tH = _pick_tile(Hp, 128, 1024)
    if Hp // tH == 1 and Hp >= 256:
        tH = _pick_tile(Hp, 128, Hp // 2)
    nH = Hp // tH

    # ---- batch (sublane) tiling: tile sized so 2 inputs x 2 pipeline buffers
    #      plus chunk temporaries stay well inside VMEM on every generation.
    tB_cap = max(gran, (target_tile_bytes // (tH * itemsize)) // gran * gran)
    if tB_cap >= 256:
        tB_cap = (tB_cap // 256) * 256      # chunk-friendly
    tB = min(tB_cap, _round_up(B, gran))
    Bp = _round_up(B, tB)
    nB = Bp // tB

    # In-kernel chunking of the (tB, tH) tile bounds the f32 cast/product
    # temporaries to (chunk_rows, tH).
    chunk_rows = _pick_tile(tB, gran, 256)
    n_chunks = tB // chunk_rows
    unroll = min(n_chunks, 8)

    # Zero-pad non-divisible shapes.  Zero batch rows do not change the raw
    # moments (we divide by the true batch size); padded hidden columns are
    # sliced off before the final sum.
    if (Bp, Hp) != (B, H):
        pad = ((0, Bp - B), (0, Hp - H))
        x = jnp.pad(x, pad)
        y = jnp.pad(y, pad)

    # ---- tile-derived VMEM budget (instead of a hard-coded 32 MiB).
    tile_bytes = tB * tH * itemsize
    est = (2 * 2 * tile_bytes                 # 2 inputs x double buffer
           + 2 * tH * 4                       # (1, tH) output, double buffered
           + 5 * tH * 4                       # moment accumulators
           + 8 * chunk_rows * tH * 4)         # per-chunk f32 temporaries (slack)
    vmem_limit = int(1.25 * est) + (2 << 20)
    vmem_limit = max(vmem_limit, 16 << 20)
    vmem_limit = min(vmem_limit, int(0.9 * vmem_cap))

    kernel = functools.partial(
        _pearsonr_kernel,
        batch_size=float(B),
        chunk_rows=chunk_rows,
        n_chunks=n_chunks,
        unroll=unroll,
    )

    corr = pl.pallas_call(
        kernel,
        out_shape=jax.ShapeDtypeStruct((1, Hp), jnp.float32),
        grid_spec=pltpu.PrefetchScalarGridSpec(
            num_scalar_prefetch=0,
            grid=(nH, nB),                       # hidden parallel, batch reduction last
            in_specs=[
                pl.BlockSpec((tB, tH), lambda h, b: (b, h)),
                pl.BlockSpec((tB, tH), lambda h, b: (b, h)),
            ],
            out_specs=pl.BlockSpec((1, tH), lambda h, b: (0, h)),
            scratch_shapes=[pltpu.VMEM((1, tH), jnp.float32) for _ in range(5)],
        ),
        compiler_params=pltpu.CompilerParams(
            dimension_semantics=("parallel", "arbitrary"),
            vmem_limit_bytes=vmem_limit,
        ),
    )(x, y)

    # Tiny final reduction over the true H columns done in the wrapper so grid
    # steps stay independent (lets v7x shard hidden tiles across both cores).
    return jnp.sum(corr[0, :H]) / H


def _pearsonr_loss_ref(x, y):
    # Pure-JAX reference mirroring audtorch.metrics.functional.pearsonr.
    x = x.astype(jnp.float32)
    y = y.astype(jnp.float32)
    b = x.shape[0]
    cx = x - x.mean(axis=0, keepdims=True)
    cy = y - y.mean(axis=0, keepdims=True)
    cov = (cx * cy).sum(axis=0) / (b - 1)
    std_x = jnp.sqrt((cx * cx).sum(axis=0) / (b - 1))
    std_y = jnp.sqrt((cy * cy).sum(axis=0) / (b - 1))
    corr = cov / (std_x * std_y)
    return corr.sum() / x.shape[1]


if __name__ == "__main__":
    key = jax.random.PRNGKey(0)
    kx, ky = jax.random.split(key)
    bs, hidden = 8, 32
    x = jax.random.normal(kx, (bs, hidden), dtype=jnp.float32)
    # make y correlated with x so correlations are non-trivial
    y = 0.5 * x + 0.5 * jax.random.normal(ky, (bs, hidden), dtype=jnp.float32)

    loss = jax.block_until_ready(pearsonr_loss(x, y))
    ref = jax.block_until_ready(_pearsonr_loss_ref(x, y))
    # f32 raw-moment + rsqrt formulation vs centered reference: small ulp-level drift.
    assert jnp.allclose(loss, ref, atol=1e-4, rtol=1e-4), (loss, ref)
    print("KERNEL_OK")
</pallas_src>

<mosaic_0001>
module attributes {stable_mosaic.version = 11 : i64} {
  func.func @_pearsonr_kernel(%arg0: i32, %arg1: i32, %arg2: memref<8x128xf32, #tpu.memory_space<vmem>>, %arg3: memref<8x128xf32, #tpu.memory_space<vmem>>, %arg4: memref<1x128xf32, #tpu.memory_space<vmem>>, %arg5: memref<1x128xf32, #tpu.memory_space<vmem>>, %arg6: memref<1x128xf32, #tpu.memory_space<vmem>>, %arg7: memref<1x128xf32, #tpu.memory_space<vmem>>, %arg8: memref<1x128xf32, #tpu.memory_space<vmem>>, %arg9: memref<1x128xf32, #tpu.memory_space<vmem>>) attributes {dimension_semantics = [#tpu.dimension_semantics<parallel>, #tpu.dimension_semantics<arbitrary>], iteration_bounds = array<i64: 1, 1>, scalar_prefetch = 0 : i64, scratch_operands = 5 : i64, tpu.core_type = #tpu.core_type<tc>, window_params = [{transform_indices = @transform_0, window_bounds = array<i64: 8, 128>}, {transform_indices = @transform_1, window_bounds = array<i64: 8, 128>}, {transform_indices = @transform_2, window_bounds = array<i64: 1, 128>}]} {
    %c0_i32 = arith.constant 0 : i32
    %0 = arith.cmpi eq, %arg1, %c0_i32 : i32
    %1 = arith.extui %0 : i1 to i32
    %c0_i32_0 = arith.constant 0 : i32
    %2 = arith.cmpi ne, %1, %c0_i32_0 : i32
    scf.if %2 {
      %cst_29 = arith.constant 0.000000e+00 : f32
      %40 = vector.broadcast %cst_29 : f32 to vector<1x128xf32>
      %c0_30 = arith.constant 0 : index
      %c0_31 = arith.constant 0 : index
      %41 = vector.load %arg5[%c0_30, %c0_31] : memref<1x128xf32, #tpu.memory_space<vmem>>, vector<1x128xf32>
      tpu.vector_store %arg5[%c0_30, %c0_31], %40 {strides = array<i32>} : memref<1x128xf32, #tpu.memory_space<vmem>>, vector<1x128xf32>,
      %cst_32 = arith.constant 0.000000e+00 : f32
      %42 = vector.broadcast %cst_32 : f32 to vector<1x128xf32>
      %c0_33 = arith.constant 0 : index
      %c0_34 = arith.constant 0 : index
      %43 = vector.load %arg6[%c0_33, %c0_34] : memref<1x128xf32, #tpu.memory_space<vmem>>, vector<1x128xf32>
      tpu.vector_store %arg6[%c0_33, %c0_34], %42 {strides = array<i32>} : memref<1x128xf32, #tpu.memory_space<vmem>>, vector<1x128xf32>,
      %cst_35 = arith.constant 0.000000e+00 : f32
      %44 = vector.broadcast %cst_35 : f32 to vector<1x128xf32>
      %c0_36 = arith.constant 0 : index
      %c0_37 = arith.constant 0 : index
      %45 = vector.load %arg7[%c0_36, %c0_37] : memref<1x128xf32, #tpu.memory_space<vmem>>, vector<1x128xf32>
      tpu.vector_store %arg7[%c0_36, %c0_37], %44 {strides = array<i32>} : memref<1x128xf32, #tpu.memory_space<vmem>>, vector<1x128xf32>,
      %cst_38 = arith.constant 0.000000e+00 : f32
      %46 = vector.broadcast %cst_38 : f32 to vector<1x128xf32>
      %c0_39 = arith.constant 0 : index
      %c0_40 = arith.constant 0 : index
      %47 = vector.load %arg8[%c0_39, %c0_40] : memref<1x128xf32, #tpu.memory_space<vmem>>, vector<1x128xf32>
      tpu.vector_store %arg8[%c0_39, %c0_40], %46 {strides = array<i32>} : memref<1x128xf32, #tpu.memory_space<vmem>>, vector<1x128xf32>,
      %cst_41 = arith.constant 0.000000e+00 : f32
      %48 = vector.broadcast %cst_41 : f32 to vector<1x128xf32>
      %c0_42 = arith.constant 0 : index
      %c0_43 = arith.constant 0 : index
      %49 = vector.load %arg9[%c0_42, %c0_43] : memref<1x128xf32, #tpu.memory_space<vmem>>, vector<1x128xf32>
      tpu.vector_store %arg9[%c0_42, %c0_43], %48 {strides = array<i32>} : memref<1x128xf32, #tpu.memory_space<vmem>>, vector<1x128xf32>,
    } else {
    }
    %c0_i32_1 = arith.constant 0 : i32
    %c8_i32 = arith.constant 8 : i32
    %3 = arith.muli %c0_i32_1, %c8_i32 : i32
    %4 = tpu.assume_multiple %3, 8 : i32
    %5 = arith.index_cast %4 : i32 to index
    %c0 = arith.constant 0 : index
    %6 = vector.load %arg2[%5, %c0] : memref<8x128xf32, #tpu.memory_space<vmem>>, vector<8x128xf32>
    %7 = arith.index_cast %4 : i32 to index
    %c0_2 = arith.constant 0 : index
    %8 = vector.load %arg3[%7, %c0_2] : memref<8x128xf32, #tpu.memory_space<vmem>>, vector<8x128xf32>
    %c0_3 = arith.constant 0 : index
    %c0_4 = arith.constant 0 : index
    %9 = vector.load %arg5[%c0_3, %c0_4] : memref<1x128xf32, #tpu.memory_space<vmem>>, vector<1x128xf32>
    %cst = arith.constant dense<0.000000e+00> : vector<128xf32>
    %10 = vector.multi_reduction <add>, %6, %cst [0] : vector<8x128xf32> to vector<128xf32>
    %11 = vector.shape_cast %10 : vector<128xf32> to vector<1x128xf32>
    %12 = arith.addf %9, %11 : vector<1x128xf32>
    %c0_5 = arith.constant 0 : index
    %c0_6 = arith.constant 0 : index
    %13 = vector.load %arg5[%c0_5, %c0_6] : memref<1x128xf32, #tpu.memory_space<vmem>>, vector<1x128xf32>
    tpu.vector_store %arg5[%c0_5, %c0_6], %12 {strides = array<i32>} : memref<1x128xf32, #tpu.memory_space<vmem>>, vector<1x128xf32>,
    %c0_7 = arith.constant 0 : index
    %c0_8 = arith.constant 0 : index
    %14 = vector.load %arg6[%c0_7, %c0_8] : memref<1x128xf32, #tpu.memory_space<vmem>>, vector<1x128xf32>
    %cst_9 = arith.constant dense<0.000000e+00> : vector<128xf32>
    %15 = vector.multi_reduction <add>, %8, %cst_9 [0] : vector<8x128xf32> to vector<128xf32>
    %16 = vector.shape_cast %15 : vector<128xf32> to vector<1x128xf32>
    %17 = arith.addf %14, %16 : vector<1x128xf32>
    %c0_10 = arith.constant 0 : index
    %c0_11 = arith.constant 0 : index
    %18 = vector.load %arg6[%c0_10, %c0_11] : memref<1x128xf32, #tpu.memory_space<vmem>>, vector<1x128xf32>
    tpu.vector_store %arg6[%c0_10, %c0_11], %17 {strides = array<i32>} : memref<1x128xf32, #tpu.memory_space<vmem>>, vector<1x128xf32>,
    %c0_12 = arith.constant 0 : index
    %c0_13 = arith.constant 0 : index
    %19 = vector.load %arg7[%c0_12, %c0_13] : memref<1x128xf32, #tpu.memory_space<vmem>>, vector<1x128xf32>
    %20 = arith.mulf %6, %8 : vector<8x128xf32>
    %cst_14 = arith.constant dense<0.000000e+00> : vector<128xf32>
    %21 = vector.multi_reduction <add>, %20, %cst_14 [0] : vector<8x128xf32> to vector<128xf32>
    %22 = vector.shape_cast %21 : vector<128xf32> to vector<1x128xf32>
    %23 = arith.addf %19, %22 : vector<1x128xf32>
    %c0_15 = arith.constant 0 : index
    %c0_16 = arith.constant 0 : index
    %24 = vector.load %arg7[%c0_15, %c0_16] : memref<1x128xf32, #tpu.memory_space<vmem>>, vector<1x128xf32>
    tpu.vector_store %arg7[%c0_15, %c0_16], %23 {strides = array<i32>} : memref<1x128xf32, #tpu.memory_space<vmem>>, vector<1x128xf32>,
    %c0_17 = arith.constant 0 : index
    %c0_18 = arith.constant 0 : index
    %25 = vector.load %arg8[%c0_17, %c0_18] : memref<1x128xf32, #tpu.memory_space<vmem>>, vector<1x128xf32>
    %26 = arith.mulf %6, %6 : vector<8x128xf32>
    %cst_19 = arith.constant dense<0.000000e+00> : vector<128xf32>
    %27 = vector.multi_reduction <add>, %26, %cst_19 [0] : vector<8x128xf32> to vector<128xf32>
    %28 = vector.shape_cast %27 : vector<128xf32> to vector<1x128xf32>
    %29 = arith.addf %25, %28 : vector<1x128xf32>
    %c0_20 = arith.constant 0 : index
    %c0_21 = arith.constant 0 : index
    %30 = vector.load %arg8[%c0_20, %c0_21] : memref<1x128xf32, #tpu.memory_space<vmem>>, vector<1x128xf32>
    tpu.vector_store %arg8[%c0_20, %c0_21], %29 {strides = array<i32>} : memref<1x128xf32, #tpu.memory_space<vmem>>, vector<1x128xf32>,
    %c0_22 = arith.constant 0 : index
    %c0_23 = arith.constant 0 : index
    %31 = vector.load %arg9[%c0_22, %c0_23] : memref<1x128xf32, #tpu.memory_space<vmem>>, vector<1x128xf32>
    %32 = arith.mulf %8, %8 : vector<8x128xf32>
    %cst_24 = arith.constant dense<0.000000e+00> : vector<128xf32>
    %33 = vector.multi_reduction <add>, %32, %cst_24 [0] : vector<8x128xf32> to vector<128xf32>
    %34 = vector.shape_cast %33 : vector<128xf32> to vector<1x128xf32>
    %35 = arith.addf %31, %34 : vector<1x128xf32>
    %c0_25 = arith.constant 0 : index
    %c0_26 = arith.constant 0 : index
    %36 = vector.load %arg9[%c0_25, %c0_26] : memref<1x128xf32, #tpu.memory_space<vmem>>, vector<1x128xf32>
    tpu.vector_store %arg9[%c0_25, %c0_26], %35 {strides = array<i32>} : memref<1x128xf32, #tpu.memory_space<vmem>>, vector<1x128xf32>,
    %c1_i32 = arith.constant 1 : i32
    %c0_i32_27 = arith.constant 0 : i32
    %37 = arith.cmpi eq, %arg1, %c0_i32_27 : i32
    %38 = arith.extui %37 : i1 to i32
    %c0_i32_28 = arith.constant 0 : i32
    %39 = arith.cmpi ne, %38, %c0_i32_28 : i32
    scf.if %39 {
      %c0_29 = arith.constant 0 : index
      %c0_30 = arith.constant 0 : index
      %40 = vector.load %arg5[%c0_29, %c0_30] : memref<1x128xf32, #tpu.memory_space<vmem>>, vector<1x128xf32>
      %c0_31 = arith.constant 0 : index
      %c0_32 = arith.constant 0 : index
      %41 = vector.load %arg6[%c0_31, %c0_32] : memref<1x128xf32, #tpu.memory_space<vmem>>, vector<1x128xf32>
      %c0_33 = arith.constant 0 : index
      %c0_34 = arith.constant 0 : index
      %42 = vector.load %arg7[%c0_33, %c0_34] : memref<1x128xf32, #tpu.memory_space<vmem>>, vector<1x128xf32>
      %43 = arith.mulf %40, %41 : vector<1x128xf32>
      %cst_35 = arith.constant 1.250000e-01 : f32
      %44 = vector.broadcast %cst_35 : f32 to vector<1x128xf32>
      %45 = arith.mulf %43, %44 : vector<1x128xf32>
      %46 = arith.subf %42, %45 : vector<1x128xf32>
      %c0_36 = arith.constant 0 : index
      %c0_37 = arith.constant 0 : index
      %47 = vector.load %arg8[%c0_36, %c0_37] : memref<1x128xf32, #tpu.memory_space<vmem>>, vector<1x128xf32>
      %48 = arith.mulf %40, %40 : vector<1x128xf32>
      %cst_38 = arith.constant 1.250000e-01 : f32
      %49 = vector.broadcast %cst_38 : f32 to vector<1x128xf32>
      %50 = arith.mulf %48, %49 : vector<1x128xf32>
      %51 = arith.subf %47, %50 : vector<1x128xf32>
      %c0_39 = arith.constant 0 : index
      %c0_40 = arith.constant 0 : index
      %52 = vector.load %arg9[%c0_39, %c0_40] : memref<1x128xf32, #tpu.memory_space<vmem>>, vector<1x128xf32>
      %53 = arith.mulf %41, %41 : vector<1x128xf32>
      %cst_41 = arith.constant 1.250000e-01 : f32
      %54 = vector.broadcast %cst_41 : f32 to vector<1x128xf32>
      %55 = arith.mulf %53, %54 : vector<1x128xf32>
      %56 = arith.subf %52, %55 : vector<1x128xf32>
      %57 = arith.mulf %51, %56 : vector<1x128xf32>
      %58 = math.rsqrt %57 : vector<1x128xf32>
      %59 = arith.mulf %46, %58 : vector<1x128xf32>
      %c0_42 = arith.constant 0 : index
      %c0_43 = arith.constant 0 : index
      %60 = vector.load %arg4[%c0_42, %c0_43] : memref<1x128xf32, #tpu.memory_space<vmem>>, vector<1x128xf32>
      tpu.vector_store %arg4[%c0_42, %c0_43], %59 {strides = array<i32>} : memref<1x128xf32, #tpu.memory_space<vmem>>, vector<1x128xf32>,
    } else {
    }
    return
  }
  func.func @transform_0(%arg0: i32, %arg1: i32) -> (i32, i32) {
    %c0_i32 = arith.constant 0 : i32
    return %arg1, %arg0 : i32, i32
  }
  func.func @transform_1(%arg0: i32, %arg1: i32) -> (i32, i32) {
    %c0_i32 = arith.constant 0 : i32
    return %arg1, %arg0 : i32, i32
  }
  func.func @transform_2(%arg0: i32, %arg1: i32) -> (i32, i32) {
    %c0_i32 = arith.constant 0 : i32
    %c0_i32_0 = arith.constant 0 : i32
    return %c0_i32, %arg0 : i32, i32
  }
}

</mosaic_0001>

<bundles_post_ra>
// kernel: tpu_custom_call.1
= control target key start
LH: loop header
LB: loop body
LE: loop exit
PB: predicated region body
PF: predicated region fallthrough
CT: control target
= control target key end

     0   :  { %7 = vsyncpa [#allocation8], 0  ;;  %s265_s0 = inlined_call_operand.hbm [shape: f32[8,128], index: 0, kind: input, shape index: {}]   ;;  %s266_s1 = inlined_call_operand.hbm [shape: f32[8,128], index: 1, kind: input, shape index: {}]   ;;  %s267_s2 = inlined_call_operand.hbm [shape: f32[1,128], index: 2, kind: output, shape index: {}]  }
   0x1   :  { %8 = vsyncpa [#allocation11], 0 }
   0x2   :  { %9 = vsyncpa [#allocation9], 0  ;;  %s210_s9 = smov [#allocation7]   ;;  %s211_s11 = smov [#allocation10]  }
   0x3   :  { %s16_s10 = sshll.u32 %s210_s9, 4  ;;  %s26_s12 = sshll.u32 %s211_s11, 4  ;;  %s17_s10 = int_to_ptr.vmem [resolvable:$true] %s16_s10  ;;  %s27_s12 = int_to_ptr.vmem [resolvable:$true] %s26_s12 }
   0x4   :  { %s138_s15 = scalar_lea.hbm %s265_s0, 128 }
   0x5   :  { %p139_p0 = scmp.ne.s32.totalorder %s265_s0, %s138_s15  ;;  %p142_p1 = scmp.lt.u32.totalorder %s138_s15, %s265_s0 }
   0x7   :  { %p144_p2 = pnand %p142_p1, %p139_p0 }
   0x9   :  { %147 = shalt.err (!%p144_p2)
}
   0xa   :  { %s148_s20 = scalar_lea.vmem %s17_s10, 128  ;;  %p153_p4 = scmp.lt.s32.totalorder %s17_s10, %s17_s10 }
   0xb   :  { %p149_p3 = scmp.ne.s32.totalorder %s17_s10, %s148_s20  ;;  %p154_p5 = scmp.lt.s32.totalorder %s148_s20, %s148_s20 }
   0xd   :  { %p155_p6 = por %p154_p5, %p153_p4 }
   0xf   :  { %p156_p7 = pnand %p155_p6, %p149_p3 }
  0x11   :  { %159 = shalt.err (!%p156_p7)
}
  0x12   :  { %19 = dma.hbm_to_vmem [thread:$0]  %s265_s0, 128, %s17_s10, [#allocation8]  }
  0x13   :  { %s160_s25 = scalar_lea.hbm %s266_s1, 128 }
  0x14   :  { %p161_p8 = scmp.ne.s32.totalorder %s266_s1, %s160_s25  ;;  %p164_p9 = scmp.lt.u32.totalorder %s160_s25, %s266_s1 }
  0x16   :  { %p166_p10 = pnand %p164_p9, %p161_p8 }
  0x18   :  { %169 = shalt.err (!%p166_p10)
}
  0x19   :  { %s170_s30 = scalar_lea.vmem %s27_s12, 128  ;;  %p175_p12 = scmp.lt.s32.totalorder %s27_s12, %s27_s12 }
  0x1a   :  { %p171_p11 = scmp.ne.s32.totalorder %s27_s12, %s170_s30  ;;  %p176_p13 = scmp.lt.s32.totalorder %s170_s30, %s170_s30 }
  0x1c   :  { %p177_p0 = por %p176_p13, %p175_p12 }
  0x1e   :  { %p178_p1 = pnand %p177_p0, %p171_p11 }
  0x20   :  { %181 = shalt.err (!%p178_p1)
}
  0x21   :  { %29 = dma.hbm_to_vmem [thread:$0]  %s266_s1, 128, %s27_s12, [#allocation11]  }
  0x22   :  { %204 = dma.done.wait [#allocation8], 128  }
  0x23   :  { %205 = vsyncadd [#allocation8], 4294967168 }
  0x24   :  { %206 = dma.done.wait [#allocation11], 128  }
  0x25   :  { %207 = vsyncadd [#allocation11], 4294967168  ;;  %v212_v0 = vmov 0.0   ;;  %v45_v1 = vld [vmem:[#allocation7] sm:$0xff]  ;;  %v46_v2 = vld [vmem:[#allocation10] sm:$0xff]  ;;  %s213_s1 = smov [#allocation12]  }
  0x26   :  { %40 = vst [vmem:[#allocation2] sm:$0x1] %v212_v0  ;;  %41 = vst [vmem:[#allocation3] sm:$0x1] %v212_v0  ;;  %v48_v3 = vrot.slane %v45_v1, 4  ;;  %v57_v4 = vrot.slane %v46_v2, 4  ;;  %v66_v5 = vmul.f32 %v46_v2, %v45_v1  ;;  %v76_v6 = vmul.f32 %v45_v1, %v45_v1 }
  0x27   :  { %42 = vst [vmem:[#allocation4] sm:$0x1] %v212_v0  ;;  %43 = vst [vmem:[#allocation5] sm:$0x1] %v212_v0  ;;  %v86_v7 = vmul.f32 %v46_v2, %v46_v2  ;;  %s122_s4 = sshll.u32 %s213_s1, 4  ;;  %s123_s4 = int_to_ptr.vmem [resolvable:$true] %s122_s4 }
  0x28   :  { %44 = vst [vmem:[#allocation6] sm:$0x1] %v212_v0  ;;  %v49_v8 = vadd.f32 %v48_v3, %v45_v1  ;;  %v58_v9 = vadd.f32 %v57_v4, %v46_v2  ;;  %v67_v10 = vrot.slane %v66_v5, 4  ;;  %v77_v11 = vrot.slane %v76_v6, 4  ;;  %s182_s5 = scalar_lea.vmem %s123_s4, 16  ;;  %s186_s6 = scalar_lea.vmem %s123_s4, 32 }
  0x29   :  { %v87_v12 = vrot.slane %v86_v7, 4  ;;  %p183_p2 = scmp.ne.s32.totalorder %s123_s4, %s182_s5  ;;  %p187_p3 = scmp.lt.s32.totalorder %s123_s4, %s123_s4 }
  0x2a   :  { %v50_v13 = vrot.slane %v49_v8, 2  ;;  %v59_v14 = vrot.slane %v58_v9, 2  ;;  %v68_v15 = vadd.f32 %v67_v10, %v66_v5  ;;  %v78_v16 = vadd.f32 %v77_v11, %v76_v6  ;;  %p188_p4 = scmp.lt.s32.totalorder %s186_s6, %s182_s5 }
  0x2b   :  { %v88_v17 = vadd.f32 %v87_v12, %v86_v7 }
  0x2c   :  { %v51_v18 = vadd.f32 %v50_v13, %v49_v8  ;;  %v60_v19 = vadd.f32 %v59_v14, %v58_v9  ;;  %v69_v20 = vrot.slane %v68_v15, 2  ;;  %v79_v21 = vrot.slane %v78_v16, 2  ;;  %p189_p5 = por %p188_p4, %p187_p3 }
  0x2d   :  { %v89_v22 = vrot.slane %v88_v17, 2  ;;  %v47_v27 = vld [vmem:[#allocation2] sm:$0x1]  ;;  %v56_v28 = vld [vmem:[#allocation3] sm:$0x1] }
  0x2e   :  { %v52_v23 = vrot.slane %v51_v18, 1  ;;  %v61_v24 = vrot.slane %v60_v19, 1  ;;  %v70_v25 = vadd.f32 %v69_v20, %v68_v15  ;;  %v80_v26 = vadd.f32 %v79_v21, %v78_v16  ;;  %v65_v34 = vld [vmem:[#allocation4] sm:$0x1]  ;;  %v75_v35 = vld [vmem:[#allocation5] sm:$0x1]  ;;  %p190_p6 = pnand %p189_p5, %p183_p2 }
  0x2f   :  { %v90_v29 = vadd.f32 %v89_v22, %v88_v17  ;;  %v85_v41 = vld [vmem:[#allocation6] sm:$0x1] }
  0x30   :  { %v53_v30 = vadd.f32 %v52_v23, %v51_v18  ;;  %v62_v31 = vadd.f32 %v61_v24, %v60_v19  ;;  %v71_v32 = vrot.slane %v70_v25, 1  ;;  %v81_v33 = vrot.slane %v80_v26, 1 }
  0x31   :  { %v91_v36 = vrot.slane %v90_v29, 1 }
  0x32   :  { %v54_v37 = vadd.f32 %v53_v30, %v47_v27  ;;  %v63_v38 = vadd.f32 %v62_v31, %v56_v28  ;;  %v72_v39 = vadd.f32 %v71_v32, %v70_v25  ;;  %v82_v40 = vadd.f32 %v81_v33, %v80_v26 }
  0x33   :  { %v92_v42 = vadd.f32 %v91_v36, %v90_v29 }
  0x34   :  { %55 = vst [vmem:[#allocation2] sm:$0x1] %v54_v37  ;;  %64 = vst [vmem:[#allocation3] sm:$0x1] %v63_v38  ;;  %v73_v43 = vadd.f32 %v72_v39, %v65_v34  ;;  %v83_v44 = vadd.f32 %v82_v40, %v75_v35 }
  0x35   :  { %v93_v45 = vadd.f32 %v92_v42, %v85_v41 }
  0x36   :  { %74 = vst [vmem:[#allocation4] sm:$0x1] %v73_v43  ;;  %84 = vst [vmem:[#allocation5] sm:$0x1] %v83_v44 }
  0x37   :  { %94 = vst [vmem:[#allocation6] sm:$0x1] %v93_v45 }
  0x3b   :  { %v98_v46 = vld [vmem:[#allocation2] sm:$0x1]  ;;  %v99_v47 = vld [vmem:[#allocation3] sm:$0x1] }
  0x3c   :  { %v105_v48 = vmul.f32 %v98_v46, %v98_v46  ;;  %v109_v49 = vmul.f32 %v99_v47, %v99_v47  ;;  %v101_v57 = vmul.f32 %v99_v47, %v98_v46 }
  0x3d   :  { %v104_v50 = vld [vmem:[#allocation5] sm:$0x1]  ;;  %v100_v59 = vld [vmem:[#allocation4] sm:$0x1] }
  0x3e   :  { %v106_v51 = vmul.f32 0.125, %v105_v48  ;;  %v108_v52 = vld [vmem:[#allocation6] sm:$0x1]  ;;  %v110_v53 = vmul.f32 0.125, %v109_v49  ;;  %v102_v58 = vmul.f32 0.125, %v101_v57 }
  0x40   :  { %v107_v54 = vsub.f32 %v104_v50, %v106_v51  ;;  %v111_v55 = vsub.f32 %v108_v52, %v110_v53  ;;  %v103_v60 = vsub.f32 %v100_v59, %v102_v58 }
  0x42   :  { %v112_v56 = vmul.f32 %v111_v55, %v107_v54 }
  0x44   :  { %136 = vrsqrt.f32 %v112_v56 }
  0x4e   :  { %v137_v61 = vpop.eup %136 }
  0x4f   :  { %v114_v62 = vmul.f32 %v137_v61, %v103_v60 }
  0x51   :  { %115 = vst [vmem:[#allocation12] sm:$0x1] %v114_v62 }
  0x52   :  { %193 = shalt.err (!%p190_p6)
}
  0x53   :  { %s194_s9 = scalar_lea.hbm %s267_s2, 16 }
  0x54   :  { %p195_p7 = scmp.ne.s32.totalorder %s267_s2, %s194_s9  ;;  %p198_p8 = scmp.lt.u32.totalorder %s194_s9, %s267_s2 }
  0x56   :  { %p200_p9 = pnand %p198_p8, %p195_p7 }
  0x58   :  { %203 = shalt.err (!%p200_p9)
}
  0x59   :  { %125 = dma.vmem_to_hbm [thread:$0]  %s123_s4, 16, %s267_s2, [#allocation9]  }
  0x5a   :  { %208 = dma.done.wait [#allocation9], 16  }
  0x5b   :  { %209 = vsyncadd [#allocation9], 4294967280 }
  0x5c   :  { %129 = vsyncpa [#allocation8], 1 }
  0x5d   :  { %130 = vsyncpa [#allocation11], 1 }
  0x5e   :  { %131 = vsyncpa [#allocation9], 1 }

</bundles_post_ra>
